<compile_context>
chip_gen: v7x
topology: tpu7x:2x2x1
jax: 0.10.0
libtpu: 0.0.40
codegen_flags: <defaults>
</compile_context>

<pallas_src>
import functools

import jax
import jax.numpy as jnp
from jax.experimental import pallas as pl
from jax.experimental.pallas import tpu as pltpu

EPS = 1e-30
LANES = 128
ACC_ROWS = 8  # one f32 vreg worth of sublanes


def _self_info(x):
    xe = x + EPS
    return -xe * jnp.log(xe)


def _binary_entropy_sum_kernel(p_ref, o_ref, acc_ref, *, block_rows):
    """Grid = (core, tile). Axis 1 ('arbitrary') walks this core's row-tiles.

    acc_ref: lane-parallel (8, 128) f32 running sum. The full cross-lane
    reduction runs only once, on the last tile of this core's slice.
    """
    i = pl.program_id(1)

    @pl.when(i == 0)
    def _():
        acc_ref[...] = jnp.zeros_like(acc_ref)

    p = p_ref[...].astype(jnp.float32)
    ent = _self_info(p) + _self_info(1.0 - p)

    # Tile-aligned reshape (block_rows, 128) -> (block_rows//8, 8, 128);
    # summing the leading axis is plain vreg adds, keeping lanes/sublanes.
    acc_ref[...] += jnp.sum(
        ent.reshape(block_rows // ACC_ROWS, ACC_ROWS, LANES), axis=0
    )

    @pl.when(i == pl.num_programs(1) - 1)
    def _():
        o_ref[...] = jnp.broadcast_to(jnp.sum(acc_ref[...]), (1, 1))


def binary_entropy_mean(p, *, block_rows=2048, num_cores=2):
    """Pallas implementation of BinaryEntropy(mean_reduce=True).forward(p)."""
    total = int(p.size)
    rows = pl.cdiv(total, LANES)

    # Effective tile rows: multiple of 8, capped for small inputs.
    br = min(block_rows, pl.cdiv(rows, ACC_ROWS) * ACC_ROWS)
    br = max(ACC_ROWS, (br // ACC_ROWS) * ACC_ROWS)

    n_tiles = pl.cdiv(rows, br)
    nc = num_cores if n_tiles >= num_cores else 1
    tiles_per_core = pl.cdiv(n_tiles, nc)
    rows_padded = tiles_per_core * nc * br

    # Keep the input in its native dtype in HBM; pad at most once.
    flat = p.reshape(-1)
    pad = rows_padded * LANES - total
    if pad:
        flat = jnp.pad(flat, (0, pad))
    x2d = flat.reshape(rows_padded, LANES)

    partial = pl.pallas_call(
        functools.partial(_binary_entropy_sum_kernel, block_rows=br),
        out_shape=jax.ShapeDtypeStruct((nc, 1), jnp.float32),
        grid_spec=pltpu.PrefetchScalarGridSpec(
            num_scalar_prefetch=0,
            grid=(nc, tiles_per_core),
            in_specs=[
                pl.BlockSpec(
                    (br, LANES), lambda c, i: (c * tiles_per_core + i, 0)
                )
            ],
            out_specs=pl.BlockSpec((1, 1), lambda c, i: (c, 0)),
            scratch_shapes=[pltpu.VMEM((ACC_ROWS, LANES), jnp.float32)],
        ),
        compiler_params=pltpu.CompilerParams(
            dimension_semantics=("parallel", "arbitrary"),
        ),
    )(x2d)

    # Tiny epilogue: combine per-core partial sums and divide by the TRUE
    # element count (padding is negligible, ~7e-29 per padded element).
    return jnp.sum(partial) / jnp.float32(total)


def _binary_entropy_mean_ref(p):
    """Pure-JAX reference mirroring the PyTorch module."""
    p = p.astype(jnp.float32)

    def info(x):
        xe = x + EPS
        return -xe * jnp.log(xe)

    return jnp.mean(info(p) + info(1.0 - p))


if __name__ == "__main__":
    key = jax.random.PRNGKey(0)
    # Probabilities in (0, 1), NCHW like a conv activation map.
    p = jax.random.uniform(
        key, (2, 4, 16, 16), dtype=jnp.float32, minval=0.0, maxval=1.0
    )

    out = jax.block_until_ready(binary_entropy_mean(p))
    ref = jax.block_until_ready(_binary_entropy_mean_ref(p))
    assert out.shape == (), f"expected scalar, got {out.shape}"
    assert jnp.allclose(out, ref, rtol=1e-5, atol=1e-6), (out, ref)

    # Exercise the padding + multi-tile + dual-core-split paths at tiny sizes.
    p2 = jax.random.uniform(
        jax.random.PRNGKey(1), (3, 5, 17, 19), dtype=jnp.float32
    )
    out2 = jax.block_until_ready(binary_entropy_mean(p2, block_rows=8))
    ref2 = jax.block_until_ready(_binary_entropy_mean_ref(p2))
    assert jnp.allclose(out2, ref2, rtol=1e-5, atol=1e-6), (out2, ref2)

    print("KERNEL_OK")
</pallas_src>

<mosaic_0001>
module attributes {stable_mosaic.version = 11 : i64} {
  func.func @_binary_entropy_sum_kernel(%arg0: i32, %arg1: i32, %arg2: memref<16x128xf32, #tpu.memory_space<vmem>>, %arg3: memref<1x1xf32, #tpu.memory_space<vmem>>, %arg4: memref<8x128xf32, #tpu.memory_space<vmem>>) attributes {dimension_semantics = [#tpu.dimension_semantics<parallel>, #tpu.dimension_semantics<arbitrary>], iteration_bounds = array<i64: 1, 1>, scalar_prefetch = 0 : i64, scratch_operands = 1 : i64, tpu.core_type = #tpu.core_type<tc>, window_params = [{transform_indices = @transform_0, window_bounds = array<i64: 16, 128>}, {transform_indices = @transform_1, window_bounds = array<i64: 1, 1>}]} {
    %c0_i32 = arith.constant 0 : i32
    %0 = arith.cmpi eq, %arg1, %c0_i32 : i32
    %1 = arith.extui %0 : i1 to i32
    %c0_i32_0 = arith.constant 0 : i32
    %2 = arith.cmpi ne, %1, %c0_i32_0 : i32
    scf.if %2 {
      %cst_13 = arith.constant 0.000000e+00 : f32
      %27 = vector.broadcast %cst_13 : f32 to vector<8x128xf32>
      %c0_14 = arith.constant 0 : index
      %c0_15 = arith.constant 0 : index
      %28 = vector.load %arg4[%c0_14, %c0_15] : memref<8x128xf32, #tpu.memory_space<vmem>>, vector<8x128xf32>
      tpu.vector_store %arg4[%c0_14, %c0_15], %27 {strides = array<i32>} : memref<8x128xf32, #tpu.memory_space<vmem>>, vector<8x128xf32>,
    } else {
    }
    %c0 = arith.constant 0 : index
    %c0_1 = arith.constant 0 : index
    %3 = vector.load %arg2[%c0, %c0_1] : memref<16x128xf32, #tpu.memory_space<vmem>>, vector<16x128xf32>
    %cst = arith.constant 1.000000e-30 : f32
    %4 = vector.broadcast %cst : f32 to vector<16x128xf32>
    %5 = arith.addf %3, %4 : vector<16x128xf32>
    %cst_2 = arith.constant 0.000000e+00 : f32
    %6 = vector.broadcast %cst_2 : f32 to vector<16x128xf32>
    %7 = arith.subf %6, %5 : vector<16x128xf32>
    %8 = math.log %5 : vector<16x128xf32>
    %9 = arith.mulf %7, %8 : vector<16x128xf32>
    %cst_3 = arith.constant 1.000000e+00 : f32
    %10 = vector.broadcast %cst_3 : f32 to vector<16x128xf32>
    %11 = arith.subf %10, %3 : vector<16x128xf32>
    %cst_4 = arith.constant 1.000000e-30 : f32
    %12 = vector.broadcast %cst_4 : f32 to vector<16x128xf32>
    %13 = arith.addf %11, %12 : vector<16x128xf32>
    %cst_5 = arith.constant 0.000000e+00 : f32
    %14 = vector.broadcast %cst_5 : f32 to vector<16x128xf32>
    %15 = arith.subf %14, %13 : vector<16x128xf32>
    %16 = math.log %13 : vector<16x128xf32>
    %17 = arith.mulf %15, %16 : vector<16x128xf32>
    %18 = arith.addf %9, %17 : vector<16x128xf32>
    %c0_6 = arith.constant 0 : index
    %c0_7 = arith.constant 0 : index
    %19 = vector.load %arg4[%c0_6, %c0_7] : memref<8x128xf32, #tpu.memory_space<vmem>>, vector<8x128xf32>
    %20 = vector.shape_cast %18 : vector<16x128xf32> to vector<2x8x128xf32>
    %cst_8 = arith.constant dense<0.000000e+00> : vector<8x128xf32>
    %21 = vector.multi_reduction <add>, %20, %cst_8 [0] : vector<2x8x128xf32> to vector<8x128xf32>
    %22 = arith.addf %19, %21 : vector<8x128xf32>
    %c0_9 = arith.constant 0 : index
    %c0_10 = arith.constant 0 : index
    %23 = vector.load %arg4[%c0_9, %c0_10] : memref<8x128xf32, #tpu.memory_space<vmem>>, vector<8x128xf32>
    tpu.vector_store %arg4[%c0_9, %c0_10], %22 {strides = array<i32>} : memref<8x128xf32, #tpu.memory_space<vmem>>, vector<8x128xf32>,
    %c0_i32_11 = arith.constant 0 : i32
    %24 = arith.cmpi eq, %arg1, %c0_i32_11 : i32
    %25 = arith.extui %24 : i1 to i32
    %c0_i32_12 = arith.constant 0 : i32
    %26 = arith.cmpi ne, %25, %c0_i32_12 : i32
    scf.if %26 {
      %c0_13 = arith.constant 0 : index
      %c0_14 = arith.constant 0 : index
      %27 = vector.load %arg4[%c0_13, %c0_14] : memref<8x128xf32, #tpu.memory_space<vmem>>, vector<8x128xf32>
      %28 = vector.shape_cast %27 : vector<8x128xf32> to vector<1x8x128xf32>
      %cst_15 = arith.constant dense<0.000000e+00> : vector<1xf32>
      %29 = vector.multi_reduction <add>, %28, %cst_15 [1, 2] : vector<1x8x128xf32> to vector<1xf32>
      %30 = vector.shape_cast %29 : vector<1xf32> to vector<1x1x1xf32>
      %31 = vector.extract %30[0, 0, 0] : f32 from vector<1x1x1xf32>
      %32 = vector.broadcast %31 : f32 to vector<1x1xf32>
      %c0_16 = arith.constant 0 : index
      %c0_17 = arith.constant 0 : index
      %33 = vector.load %arg3[%c0_16, %c0_17] : memref<1x1xf32, #tpu.memory_space<vmem>>, vector<1x1xf32>
      tpu.vector_store %arg3[%c0_16, %c0_17], %32 {strides = array<i32>} : memref<1x1xf32, #tpu.memory_space<vmem>>, vector<1x1xf32>,
    } else {
    }
    return
  }
  func.func @transform_0(%arg0: i32, %arg1: i32) -> (i32, i32) {
    %c1_i32 = arith.constant 1 : i32
    %0 = arith.muli %arg0, %c1_i32 : i32
    %1 = arith.addi %0, %arg1 : i32
    %c0_i32 = arith.constant 0 : i32
    %c0_i32_0 = arith.constant 0 : i32
    return %1, %c0_i32 : i32, i32
  }
  func.func @transform_1(%arg0: i32, %arg1: i32) -> (i32, i32) {
    %c0_i32 = arith.constant 0 : i32
    %c0_i32_0 = arith.constant 0 : i32
    return %arg0, %c0_i32 : i32, i32
  }
}

</mosaic_0001>

<bundles_post_ra>
// kernel: tpu_custom_call.1
= control target key start
LH: loop header
LB: loop body
LE: loop exit
PB: predicated region body
PF: predicated region fallthrough
CT: control target
= control target key end

     0   :  { %6 = vsyncpa [#allocation4], 0  ;;  %s195_s0 = inlined_call_operand.hbm [shape: f32[16,128], index: 0, kind: input, shape index: {}]   ;;  %s196_s1 = inlined_call_operand.hbm [shape: f32[1,1], index: 1, kind: output, shape index: {}]  }
   0x1   :  { %7 = vsyncpa [#allocation5], 0  ;;  %s157_s6 = smov [#allocation3]   ;;  %s109_s10 = scalar_lea.hbm %s195_s0, 256 }
   0x2   :  { %s17_s7 = sshll.u32 %s157_s6, 4  ;;  %p110_p0 = scmp.ne.s32.totalorder %s195_s0, %s109_s10  ;;  %s18_s7 = int_to_ptr.vmem [resolvable:$true] %s17_s7 }
   0x3   :  { %p113_p1 = scmp.lt.u32.totalorder %s109_s10, %s195_s0 }
   0x5   :  { %p115_p2 = pnand %p113_p1, %p110_p0 }
   0x7   :  { %118 = shalt.err (!%p115_p2)
}
   0x8   :  { %s119_s15 = scalar_lea.vmem %s18_s7, 256  ;;  %p124_p4 = scmp.lt.s32.totalorder %s18_s7, %s18_s7 }
   0x9   :  { %p120_p3 = scmp.ne.s32.totalorder %s18_s7, %s119_s15  ;;  %p125_p5 = scmp.lt.s32.totalorder %s119_s15, %s119_s15 }
   0xb   :  { %p126_p6 = por %p125_p5, %p124_p4 }
   0xd   :  { %p127_p7 = pnand %p126_p6, %p120_p3 }
   0xf   :  { %130 = shalt.err (!%p127_p7)
}
  0x10   :  { %s158_s16 = smov 128   ;;  %s159_s17 = smov 8  }
  0x11   :  { %23 = dma.hbm_to_vmem [thread:$0]  %s195_s0, 256, %s18_s7, [#allocation4], %s158_s16, %s158_s16, %s159_s17  }
  0x12   :  { %153 = dma.done.wait [#allocation4], 256  }
  0x13   :  { %154 = vsyncadd [#allocation4], 4294967040  ;;  %v34_v0 = vld [vmem:[#allocation3] sm:$0xff]  ;;  %v35_v1 = vld [vmem:[#allocation3 + $0x8] sm:$0xff]  ;;  %s160_s0 = smov [#allocation6]   ;;  %vm78_vm0 = vcmask 0  }
  0x14   :  { %v36_v2 = vadd.f32 1e-30, %v34_v0  ;;  %v37_v3 = vadd.f32 1e-30, %v35_v1  ;;  %v46_v4 = vsub.f32 1.0, %v34_v0  ;;  %v47_v5 = vsub.f32 1.0, %v35_v1 }
  0x15   :  { %s86_s20 = sshll.u32 %s160_s0, 4  ;;  %s87_s20 = int_to_ptr.vmem [resolvable:$true] %s86_s20 }
  0x16   :  { %101 = vlog2.f32 %v36_v2  ;;  %v48_v6 = vadd.f32 1e-30, %v46_v4  ;;  %v49_v7 = vadd.f32 1e-30, %v47_v5  ;;  %v38_v8 = vsub.f32 0.0, %v36_v2  ;;  %s131_s22 = scalar_lea.vmem %s87_s20, 16  ;;  %p136_p9 = scmp.lt.s32.totalorder %s87_s20, %s87_s20 }
  0x17   :  { %103 = vlog2.f32 %v37_v3  ;;  %v39_v10 = vsub.f32 0.0, %v37_v3  ;;  %p132_p8 = scmp.ne.s32.totalorder %s87_s20, %s131_s22  ;;  %s135_s23 = scalar_lea.vmem %s87_s20, 32 }
  0x18   :  { %105 = vlog2.f32 %v48_v6  ;;  %v50_v13 = vsub.f32 0.0, %v48_v6  ;;  %v51_v16 = vsub.f32 0.0, %v49_v7  ;;  %p137_p10 = scmp.lt.s32.totalorder %s135_s23, %s131_s22 }
  0x19   :  { %107 = vlog2.f32 %v49_v7 }
  0x1a   :  { %p138_p11 = por %p137_p10, %p136_p9 }
  0x1c   :  { %p139_p12 = pnand %p138_p11, %p132_p8 }
  0x20   :  { %v102_v9 = vpop.eup %101 }
  0x21   :  { %v104_v11 = vpop.eup %103  ;;  %v41_v12 = vmul.f32 0.6931472, %v102_v9 }
  0x22   :  { %v106_v14 = vpop.eup %105  ;;  %v43_v15 = vmul.f32 0.6931472, %v104_v11 }
  0x23   :  { %v108_v17 = vpop.eup %107  ;;  %v44_v18 = vmul.f32 %v41_v12, %v38_v8  ;;  %v53_v19 = vmul.f32 0.6931472, %v106_v14 }
  0x24   :  { %v45_v20 = vmul.f32 %v43_v15, %v39_v10  ;;  %v55_v21 = vmul.f32 0.6931472, %v108_v17 }
  0x25   :  { %v56_v22 = vmul.f32 %v53_v19, %v50_v13 }
  0x26   :  { %v57_v23 = vmul.f32 %v55_v21, %v51_v16 }
  0x27   :  { %v58_v24 = vadd.f32 %v56_v22, %v44_v18 }
  0x28   :  { %v59_v25 = vadd.f32 %v57_v23, %v45_v20 }
  0x2a   :  { %v61_v26 = vadd.f32 %v59_v25, %v58_v24 }
  0x2c   :  { %68 = vadd.xlane.f32.xlu0 %v61_v26 }
  0xb9   :  { %v69_v27 = vpop.xlane.xlu0 %68 }
  0xba   :  { %v70_v28 = vrot.slane %v69_v27, 4 }
  0xbc   :  { %v71_v29 = vadd.f32 %v70_v28, %v69_v27 }
  0xbe   :  { %v72_v30 = vrot.slane %v71_v29, 2 }
  0xc0   :  { %v73_v31 = vadd.f32 %v72_v30, %v71_v29 }
  0xc2   :  { %v74_v32 = vrot.slane %v73_v31, 1 }
  0xc4   :  { %v75_v33 = vadd.f32 %v74_v32, %v73_v31 }
  0xc6   :  { %95 = vpush %v75_v33 }
  0xf7   :  { %s96_s21 = spop %95 }
  0xf8   :  { %v77_v34 = vstv %s96_s21 }
  0xf9   :  { %79 = vst.msk [vmem:[#allocation6] sm:$0x1] %vm78_vm0, %v77_v34 }
  0xfa   :  { %142 = shalt.err (!%p139_p12)
}
  0xfb   :  { %s143_s26 = scalar_lea.hbm %s196_s1, 16 }
  0xfc   :  { %p144_p13 = scmp.ne.s32.totalorder %s196_s1, %s143_s26  ;;  %p147_p0 = scmp.lt.u32.totalorder %s143_s26, %s196_s1 }
  0xfe   :  { %p149_p1 = pnand %p147_p0, %p144_p13 }
 0x100   :  { %152 = shalt.err (!%p149_p1)
}
 0x101   :  { %89 = dma.vmem_to_hbm [thread:$0]  %s87_s20, 16, %s196_s1, [#allocation5]  }
 0x102   :  { %155 = dma.done.wait [#allocation5], 16  }
 0x103   :  { %156 = vsyncadd [#allocation5], 4294967280 }
 0x104   :  { %93 = vsyncpa [#allocation4], 1 }
 0x105   :  { %94 = vsyncpa [#allocation5], 1 }

</bundles_post_ra>
